<compile_context>
chip_gen: v6e
topology: v6e:2x2x1
jax: 0.10.0
libtpu: 0.0.40
codegen_flags: <defaults>
</compile_context>

<pallas_src>
import jax
import jax.numpy as jnp
from jax import lax
from jax.experimental import pallas as pl
from jax.experimental.pallas import tpu as pltpu

B, C_IN, H, W = 2, 4, 16, 16
C_OUT = 8
KH = KW = 3
N_CLS = 10
HW = H * W
BHW = B * H * W
K_IM2COL = KH * KW * C_IN  # 36


def feature_head_kernel(im2col_ref, wconv_ref, bconv_ref, wfc_ref, bfc_ref, out_ref):
    # im2col_ref : (36, 512)  column j = b*HW + h*W + w, row k = (kh*KW+kw)*C_IN + ci
    # wconv_ref  : (8, 36)    transposed conv weight
    # bconv_ref  : (8, 1)
    # wfc_ref    : (8, 10)
    # bfc_ref    : (1, 10)
    # out_ref    : (2, 10)

    # --- feature_extractor: Conv2d(3x3, pad=1) + bias + ReLU as one lane-dense GEMM ---
    conv = jnp.dot(wconv_ref[...], im2col_ref[...],
                   preferred_element_type=jnp.float32)             # (C_OUT, BHW) = (8, 512)
    conv = jnp.maximum(conv + bconv_ref[...], 0.0)

    # Global average pool over spatial dims, expressed as an MXU contraction over the
    # lane axis: feats[b, c] = (1/HW) * sum over batch-b's lane segment of conv[c, :].
    j = lax.broadcasted_iota(jnp.int32, (B, BHW), 1)
    b = lax.broadcasted_iota(jnp.int32, (B, BHW), 0)
    in_seg = (j >= b * HW) & (j < (b + 1) * HW)
    pool = jnp.where(in_seg, jnp.float32(1.0 / HW), jnp.float32(0.0))  # (B, BHW)
    feats = lax.dot_general(pool, conv, (((1,), (1,)), ((), ())),
                            preferred_element_type=jnp.float32)    # (B, C_OUT) = (2, 8)

    # --- head: Linear(C_OUT -> N_CLS) ---
    logits = jnp.dot(feats, wfc_ref[...], preferred_element_type=jnp.float32)
    out_ref[...] = logits + bfc_ref[...]                           # (B, N_CLS) = (2, 10)


@jax.jit
def feature_head_split(x_nchw, w_conv, b_conv, w_fc, b_fc):
    """x_nchw: (B, C_IN, H, W) float32 (PyTorch layout) -> logits (B, N_CLS) float32."""
    xp = jnp.pad(x_nchw, ((0, 0), (0, 0), (1, 1), (1, 1)))         # pad=1, zeros
    # Build im2col^T with the long B*H*W axis last (lane-dense inside the kernel).
    patches = jnp.stack(
        [xp[:, :, kh:kh + H, kw:kw + W] for kh in range(KH) for kw in range(KW)],
        axis=0)                                                     # (9, B, C_IN, H, W)
    im2col_t = patches.transpose(0, 2, 1, 3, 4).reshape(K_IM2COL, BHW)  # (36, 512)
    wconv_t = w_conv.reshape(K_IM2COL, C_OUT).T                     # (8, 36), same k order
    bconv_c = b_conv.reshape(C_OUT, 1)
    bfc_r = b_fc.reshape(1, N_CLS)

    vmem = pl.BlockSpec(memory_space=pltpu.MemorySpace.VMEM)
    return pl.pallas_call(
        feature_head_kernel,
        out_shape=jax.ShapeDtypeStruct((B, N_CLS), jnp.float32),
        in_specs=[vmem, vmem, vmem, vmem, vmem],
        out_specs=vmem,
    )(im2col_t, wconv_t, bconv_c, w_fc, bfc_r)


def reference(x_nchw, w_conv, b_conv, w_fc, b_fc):
    y = lax.conv_general_dilated(
        x_nchw, w_conv, window_strides=(1, 1), padding="SAME",
        dimension_numbers=("NCHW", "HWIO", "NCHW"))
    y = jnp.maximum(y + b_conv.reshape(1, C_OUT, 1, 1), 0.0)
    feats = jnp.mean(y, axis=(2, 3))
    return feats @ w_fc + b_fc


if __name__ == "__main__":
    key = jax.random.PRNGKey(0)
    kx, kw1, kb1, kw2, kb2 = jax.random.split(key, 5)

    # Deterministic synthetic parameters (shapes from the chosen instantiation).
    x_nchw = jax.random.normal(kx, (B, C_IN, H, W), jnp.float32)                  # PyTorch input
    w_conv = 0.1 * jax.random.normal(kw1, (KH, KW, C_IN, C_OUT), jnp.float32)     # HWIO
    b_conv = 0.1 * jax.random.normal(kb1, (C_OUT,), jnp.float32)
    w_fc = 0.1 * jax.random.normal(kw2, (C_OUT, N_CLS), jnp.float32)
    b_fc = 0.1 * jax.random.normal(kb2, (N_CLS,), jnp.float32)

    out = feature_head_split(x_nchw, w_conv, b_conv, w_fc, b_fc)
    out = jax.block_until_ready(out)

    ref = jax.block_until_ready(reference(x_nchw, w_conv, b_conv, w_fc, b_fc))
    assert out.shape == (B, N_CLS)
    assert jnp.allclose(out, ref, rtol=1e-4, atol=1e-4), (out, ref)

    print("KERNEL_OK")
</pallas_src>

<mosaic_0001>
module attributes {stable_mosaic.version = 11 : i64} {
  func.func @feature_head_kernel(%arg0: memref<36x512xf32, #tpu.memory_space<vmem>>, %arg1: memref<8x36xf32, #tpu.memory_space<vmem>>, %arg2: memref<8x1xf32, #tpu.memory_space<vmem>>, %arg3: memref<8x10xf32, #tpu.memory_space<vmem>>, %arg4: memref<1x10xf32, #tpu.memory_space<vmem>>, %arg5: memref<2x10xf32, #tpu.memory_space<vmem>>) attributes {dimension_semantics = [], scalar_prefetch = 0 : i64, scratch_operands = 0 : i64, tpu.core_type = #tpu.core_type<tc>} {
    %c0 = arith.constant 0 : index
    %c0_0 = arith.constant 0 : index
    %0 = vector.load %arg1[%c0, %c0_0] : memref<8x36xf32, #tpu.memory_space<vmem>>, vector<8x36xf32>
    %c0_1 = arith.constant 0 : index
    %c0_2 = arith.constant 0 : index
    %1 = vector.load %arg0[%c0_1, %c0_2] : memref<36x512xf32, #tpu.memory_space<vmem>>, vector<36x512xf32>
    %cst = arith.constant dense<0.000000e+00> : vector<8x512xf32>
    %2 = tpu.matmul %0, %1, %cst {dimension_numbers = #tpu.dot_dimension_numbers<[1], [0], [0], [1], [0, 0, 1, 1], [], []>} : vector<8x36xf32>, vector<36x512xf32>, vector<8x512xf32> -> vector<8x512xf32>
    %c0_3 = arith.constant 0 : index
    %c0_4 = arith.constant 0 : index
    %3 = vector.load %arg2[%c0_3, %c0_4] : memref<8x1xf32, #tpu.memory_space<vmem>>, vector<8x1xf32>
    %4 = vector.broadcast %3 : vector<8x1xf32> to vector<8x512xf32>
    %5 = arith.addf %2, %4 : vector<8x512xf32>
    %cst_5 = arith.constant 0.000000e+00 : f32
    %6 = vector.broadcast %cst_5 : f32 to vector<8x512xf32>
    %7 = arith.maximumf %5, %6 : vector<8x512xf32>
    %8 = tpu.iota {dimensions = array<i32: 1>} : vector<2x512xi32>
    %9 = tpu.iota {dimensions = array<i32: 0>} : vector<2x512xi32>
    %c256_i32 = arith.constant 256 : i32
    %10 = vector.broadcast %c256_i32 : i32 to vector<2x512xi32>
    %11 = arith.muli %9, %10 : vector<2x512xi32>
    %12 = arith.cmpi sge, %8, %11 : vector<2x512xi32>
    %c1_i32 = arith.constant 1 : i32
    %13 = vector.broadcast %c1_i32 : i32 to vector<2x512xi32>
    %14 = arith.addi %9, %13 : vector<2x512xi32>
    %c256_i32_6 = arith.constant 256 : i32
    %15 = vector.broadcast %c256_i32_6 : i32 to vector<2x512xi32>
    %16 = arith.muli %14, %15 : vector<2x512xi32>
    %17 = arith.cmpi slt, %8, %16 : vector<2x512xi32>
    %18 = arith.andi %12, %17 : vector<2x512xi1>
    %cst_7 = arith.constant 3.906250e-03 : f32
    %cst_8 = arith.constant 0.000000e+00 : f32
    %19 = vector.broadcast %cst_7 : f32 to vector<2x512xf32>
    %20 = vector.broadcast %cst_8 : f32 to vector<2x512xf32>
    %21 = arith.select %18, %19, %20 : vector<2x512xi1>, vector<2x512xf32>
    %cst_9 = arith.constant dense<0.000000e+00> : vector<2x8xf32>
    %22 = tpu.matmul %21, %7, %cst_9 {dimension_numbers = #tpu.dot_dimension_numbers<[1], [1], [0], [0], [0, 0, 1, 0], [], []>} : vector<2x512xf32>, vector<8x512xf32>, vector<2x8xf32> -> vector<2x8xf32>
    %c0_10 = arith.constant 0 : index
    %c0_11 = arith.constant 0 : index
    %23 = vector.load %arg3[%c0_10, %c0_11] : memref<8x10xf32, #tpu.memory_space<vmem>>, vector<8x10xf32>
    %cst_12 = arith.constant dense<0.000000e+00> : vector<2x10xf32>
    %24 = tpu.matmul %22, %23, %cst_12 {dimension_numbers = #tpu.dot_dimension_numbers<[1], [0], [0], [1], [0, 0, 1, 1], [], []>} : vector<2x8xf32>, vector<8x10xf32>, vector<2x10xf32> -> vector<2x10xf32>
    %c0_13 = arith.constant 0 : index
    %c0_14 = arith.constant 0 : index
    %25 = vector.load %arg4[%c0_13, %c0_14] : memref<1x10xf32, #tpu.memory_space<vmem>>, vector<1x10xf32>
    %26 = vector.broadcast %25 : vector<1x10xf32> to vector<2x10xf32>
    %27 = arith.addf %24, %26 : vector<2x10xf32>
    %c0_15 = arith.constant 0 : index
    %c0_16 = arith.constant 0 : index
    %28 = vector.load %arg5[%c0_15, %c0_16] : memref<2x10xf32, #tpu.memory_space<vmem>>, vector<2x10xf32>
    tpu.vector_store %arg5[%c0_15, %c0_16], %27 {strides = array<i32>} : memref<2x10xf32, #tpu.memory_space<vmem>>, vector<2x10xf32>,
    return
  }
}

</mosaic_0001>

<bundles_post_ra>
// kernel: feature_head_split.1
= control target key start
LH: loop header
LB: loop body
LE: loop exit
PB: predicated region body
PF: predicated region fallthrough
CT: control target
= control target key end

     0   :  { %vm52_vm0 = vcmask 1043456   ;;  %s644_s0 = inlined_call_operand.vmem [shape: f32[36,512], index: 0, kind: input, shape index: {}]   ;;  %s645_s1 = inlined_call_operand.vmem [shape: f32[8,36], index: 1, kind: input, shape index: {}]   ;;  %s646_s2 = inlined_call_operand.vmem [shape: f32[8,1], index: 2, kind: input, shape index: {}]   ;;  %s647_s3 = inlined_call_operand.vmem [shape: f32[8,10], index: 3, kind: input, shape index: {}]   ;;  %s648_s4 = inlined_call_operand.vmem [shape: f32[1,10], index: 4, kind: input, shape index: {}]   ;;  %s649_s5 = inlined_call_operand.hbm [shape: f32[2,10], index: 5, kind: output, shape index: {}]  }
   0x1   :  { %v39_v0 = vld [vmem:[%s644_s0 + $0x88] sm:$0xf]  ;;  %v41_v1 = vld [vmem:[%s644_s0 + $0x98] sm:$0xf]  ;;  %v38_v3 = vld [vmem:[%s644_s0 + $0x80] sm:$0xf] }
   0x2   :  { %v35_v2 = vld [vmem:[%s644_s0 + $0x68] sm:$0xff]  ;;  %475 = vmatprep.subr.msk.mxu0 %vm52_vm0, %v39_v0  ;;  %478 = vmatprep.subr.msk.mxu1 %vm52_vm0, %v41_v1  ;;  %v40_v4 = vld [vmem:[%s644_s0 + $0x90] sm:$0xf]  ;;  %v37_v5 = vld [vmem:[%s644_s0 + $0x78] sm:$0xff] }
   0x3   :  { %476 = vmatpush1.msk.msra.mxu0 %vm52_vm0, %v38_v3  ;;  %479 = vmatpush1.msk.msra.mxu1 %vm52_vm0, %v40_v4  ;;  %v34_v6 = vld [vmem:[%s644_s0 + $0x60] sm:$0xff]  ;;  %v36_v7 = vld [vmem:[%s644_s0 + $0x70] sm:$0xff]  ;;  %v31_v8 = vld [vmem:[%s644_s0 + $0x48] sm:$0xff] }
   0x4   :  { %89 = vmatprep.subr.mxu0 %v35_v2  ;;  %160 = vmatprep.subr.mxu1 %v37_v5  ;;  %v33_v9 = vld [vmem:[%s644_s0 + $0x58] sm:$0xff]  ;;  %v30_v10 = vld [vmem:[%s644_s0 + $0x40] sm:$0xff]  ;;  %v32_v11 = vld [vmem:[%s644_s0 + $0x50] sm:$0xff] }
   0x5   :  { %90 = vmatpush1.msra.mxu0 %v34_v6  ;;  %161 = vmatpush1.msra.mxu1 %v36_v7  ;;  %v27_v12 = vld [vmem:[%s644_s0 + $0x28] sm:$0xff]  ;;  %v29_v13 = vld [vmem:[%s644_s0 + $0x38] sm:$0xff]  ;;  %v26_v14 = vld [vmem:[%s644_s0 + $0x20] sm:$0xff] }
   0x6   :  { %91 = vmatprep.subr.mxu0 %v31_v8  ;;  %162 = vmatprep.subr.mxu1 %v33_v9  ;;  %v28_v15 = vld [vmem:[%s644_s0 + $0x30] sm:$0xff]  ;;  %v23_v16 = vld [vmem:[%s644_s0 + $0x8] sm:$0xff]  ;;  %v25_v17 = vld [vmem:[%s644_s0 + $0x18] sm:$0xff] }
   0x7   :  { %92 = vmatpush1.msra.mxu0 %v30_v10  ;;  %163 = vmatpush1.msra.mxu1 %v32_v11  ;;  %v22_v18 = vld [vmem:[%s644_s0] sm:$0xff] }
   0x8   :  { %93 = vmatprep.subr.mxu0 %v27_v12  ;;  %164 = vmatprep.subr.mxu1 %v29_v13 }
   0x9   :  { %10 = vsyncpa [#allocation3], 0  ;;  %94 = vmatpush1.msra.mxu0 %v26_v14  ;;  %165 = vmatpush1.msra.mxu1 %v28_v15  ;;  %v24_v19 = vld [vmem:[%s644_s0 + $0x10] sm:$0xff]  ;;  %v21_v20 = vld [vmem:[%s645_s1] sm:$0xff]  ;;  %vm48_vm1 = vcmask 293888   ;;  %v522_v21 = vmov 0.0   ;;  %v211_v24 = vlaneseq }
   0xa   :  { %95 = vmatprep.subr.mxu0 %v23_v16  ;;  %166 = vmatprep.subr.mxu1 %v25_v17  ;;  %v42_v22 = vld [vmem:[%s646_s2] sm:$0xff]  ;;  %v523_v23 = vmov 0   ;;  %v524_v33 = vmov 0.00390625   ;;  %vm525_vm14 = vmmov 0   ;;  %vm385_vm15 = vcmask 64512   ;;  %s526_s13 = smov [#allocation2]  }
   0xb   :  { %96 = vmatpush1.msra.mxu0 %v22_v18  ;;  %129 = vmatprep.mubr.f32.mxu0 %v522_v21  ;;  %v217_v25 = vshrl.u32 %v211_v24, 7  ;;  %v212_v26 = vand.u32 127, %v211_v24  ;;  %v377_v49 = vld [vmem:[%s647_s3] sm:$0xff]  ;;  %s467_s14 = sshll.u32 %s526_s13, 4  ;;  %vm459_vm0 = vcmask 74752   ;;  %s468_s14 = int_to_ptr.vmem [resolvable:$true] %s467_s14 }
   0xc   :  { %167 = vmatpush1.msra.mxu1 %v24_v19  ;;  %200 = vmatprep.mubr.f32.mxu1 %v522_v21  ;;  %v485_v55 = vld [vmem:[%s648_s4] ss:$0 sm:$0xff]  ;;  %s500_s3 = scalar_lea.vmem %s468_s14, 32  ;;  %p505_p1 = scmp.lt.s32.totalorder %s468_s14, %s468_s14 }
   0xd   :  { %477 = vmatmul.mubr.msk.f32.vlgmr.msra.gmra.mxu0 %vm48_vm1, %v21_v20  ;;  %480 = vmatmul.mubr.msk.f32.vlgmr.msra.gmra.mxu1 %vm48_vm1, %v21_v20  ;;  %v223_v27 = vadd.s32 1, %v217_v25  ;;  %v213_v28 = vadd.s32 128, %v212_v26  ;;  %v218_v29 = vmul.u32 256, %v217_v25  ;;  %v215_v31 = vadd.s32 384, %v212_v26  ;;  %p501_p0 = scmp.ne.s32.totalorder %s468_s14, %s500_s3  ;;  %p506_p2 = scmp.lt.s32.totalorder %s500_s3, %s500_s3 }
   0xe   :  { %499 = vset.pattern.permute.xlu0 %v523_v23  ;;  %v214_v32 = vadd.s32 256, %v212_v26 }
   0xf   :  { %45 = vperm.xlu0 %499, %v42_v22   ;;  %v224_v30 = vmul.u32 256, %v223_v27  ;;  %vm220_vm2 = vcmp.ge.s32.totalorder %v213_v28, %v218_v29  ;;  %vm222_vm4 = vcmp.ge.s32.totalorder %v215_v31, %v218_v29  ;;  %vm219_vm7 = vcmp.ge.s32.totalorder %v212_v26, %v218_v29  ;;  %p507_p3 = por %p506_p2, %p505_p1 }
  0x10   :  { %vm221_vm9 = vcmp.ge.s32.totalorder %v214_v32, %v218_v29 }
  0x11   :  { %vm226_vm3 = vcmp.lt.s32.totalorder %v213_v28, %v224_v30  ;;  %vm228_vm6 = vcmp.lt.s32.totalorder %v215_v31, %v224_v30  ;;  %vm225_vm8 = vcmp.lt.s32.totalorder %v212_v26, %v224_v30  ;;  %vm227_vm11 = vcmp.lt.s32.totalorder %v214_v32, %v224_v30  ;;  %p508_p4 = pnand %p507_p3, %p501_p0 }
  0x12   :  { %vm230_vm5 = vmand %vm220_vm2, %vm226_vm3 }
  0x13   :  { %481 = vmatprep.mubr.msk.f32.mxu0 %vm230_vm5, %v524_v33  ;;  %vm232_vm10 = vmand %vm222_vm4, %vm228_vm6 }
  0x14   :  { %483 = vmatprep.mubr.msk.f32.mxu1 %vm232_vm10, %v524_v33  ;;  %vm623_vm12 = vmand %vm219_vm7, %vm225_vm8 }
  0x15   :  { %vm627_vm13 = vmand %vm221_vm9, %vm227_vm11 }
  0x8a   :  { %v46_v36 = vpop.permute.xlu0 %45 }
  0xcd   :  { %v131_v37 = vpop.f32.mrf.mxu0  ;;  %v202_v38 = vpop.f32.mrf.mxu1 }
  0xce   :  { %v132_v39 = vadd.f32 %v131_v37, %v46_v36  ;;  %v203_v40 = vadd.f32 %v202_v38, %v46_v36 }
  0xcf   :  { %v133_v41 = vpop.f32.mrf.mxu0  ;;  %v204_v42 = vpop.f32.mrf.mxu1 }
  0xd0   :  { %v134_v43 = vadd.f32 %v133_v41, %v46_v36  ;;  %v205_v44 = vadd.f32 %v204_v42, %v46_v36  ;;  %v207_v47 = vmax.f32 %v132_v39, 0.0  ;;  %v209_v48 = vmax.f32 %v203_v40, 0.0 }
  0xd2   :  { %v208_v45 = vmax.f32 %v134_v43, 0.0  ;;  %v210_v46 = vmax.f32 %v205_v44, 0.0 }
  0xd4   :  { %267 = vmatprep.subr.mxu0 %v208_v45  ;;  %337 = vmatprep.subr.mxu1 %v210_v46 }
  0xd5   :  { %268 = vmatpush1.xpose.msra.mxu0 %v207_v47  ;;  %338 = vmatpush1.xpose.msra.mxu1 %v209_v48 }
  0xd6   :  { %489 = vmatprep.subr.mxu0 %v522_v21 }
  0xd8   :  { %482 = vmatmul.mubr.msk.f32.vlgmr.msra.gmra.mxu0 %vm623_vm12, %v524_v33  ;;  %484 = vmatmul.mubr.msk.f32.vlgmr.msra.gmra.mxu1 %vm627_vm13, %v524_v33 }
  0xd9   :  { %490 = vmatpush3.msra.mxu0 %v377_v49  ;;  %491 = vmatprep.mubr.msk.f32.mxu0 %vm525_vm14, %v522_v21 }
 0x198   :  { %v303_v50 = vpop.f32.mrf.mxu0  ;;  %v373_v51 = vpop.f32.mrf.mxu1 }
 0x199   :  { %v374_v52 = vadd.f32 %v373_v51, %v303_v50 }
 0x19a   :  { %v305_v53 = vpop.f32.mrf.mxu0  ;;  %v375_v54 = vpop.f32.mrf.mxu1 }
 0x19b   :  { %492 = vmatmul.mubr.msk.f32.vlgmr.msra.gmra.mxu0 %vm385_vm15, %v374_v52 }
 0x25b   :  { %v455_v56 = vpop.f32.mrf.mxu0 }
 0x25c   :  { %v456_v57 = vadd.f32 %v485_v55, %v455_v56 }
 0x25d   :  { %v493_v58 = vpop.f32.mrf.mxu0 }
 0x25e   :  { %460 = vst.msk [vmem:[#allocation2] sm:$0x3] %vm459_vm0, %v456_v57 }
 0x25f   :  { %511 = shalt.err (!%p508_p4)
}
 0x260   :  { %470 = dma.vmem_to_hbm [thread:$0]  %s468_s14, 32, %s649_s5, [#allocation3]  }
 0x261   :  { %520 = dma.done.wait [#allocation3], 32  }
 0x262   :  { %521 = vsyncadd [#allocation3], 4294967264 }
 0x263   :  { %474 = vsyncpa [#allocation3], 1 }

</bundles_post_ra>
